<compile_context>
chip_gen: v6e
topology: v6e:2x2x1
jax: 0.10.0
libtpu: 0.0.40
codegen_flags: <defaults>
</compile_context>

<pallas_src>
import jax
import jax.numpy as jnp
from jax.experimental import pallas as pl
from jax.experimental.pallas import tpu as pltpu


def _pitch_encoder_kernel(f0_ref, wb_ref, o_ref):
    # f0_ref: (1, TT)       -- one batch row, T on the lane axis (lane-dense)
    # wb_ref: (C_out, 2)    -- col 0 = conv weight (C_in=1), col 1 = bias
    # o_ref:  (C_out, TT)   -- NCW output tile (lane-dense last dim)
    x = f0_ref[...].astype(jnp.float32)          # compute in f32 regardless of input dtype
    x_log = jnp.log(x + 1.0)                     # EUP log; touches 1/C_out of the data
    w = wb_ref[:, 0:1]                           # (C_out, 1)
    b = wb_ref[:, 1:2]                           # (C_out, 1)
    # Rank-1 outer product + bias on the VPU (no MXU round trip for K=1).
    o_ref[...] = (w * x_log + b).astype(o_ref.dtype)


def pitch_encoder_forward(f0, weight, bias, *, t_tile=4096, out_dtype=None):
    """f0: (B, 1, T); weight: (C_out, 1, 1); bias: (C_out,) -> (B, C_out, T).

    t_tile is rounded down to a multiple of 128 and capped at 4096 so the
    double-buffered (C_out, TT) f32 output tiles fit v5e's 16 MiB default
    scoped VMEM while keeping stores unmasked and the per-step overhead
    amortized on v6e/v7x.
    """
    B, C_in, T = f0.shape
    assert C_in == 1, "PitchEncoder uses in_channels=1"
    C_out = weight.shape[0]
    out_dtype = out_dtype if out_dtype is not None else f0.dtype

    # 128-aligned tiles (unmasked vst / full-tile output DMAs); cap for v5e VMEM.
    t_tile = max(128, min(4096, (int(t_tile) // 128) * 128))
    if T <= t_tile:
        TT = T            # single full-extent tile per batch row (always legal)
    else:
        TT = t_tile       # multiple of 128; only the ragged tail uses masked stores
    grid = (B, pl.cdiv(T, TT))

    # Pack weight + bias into one small resident f32 block: (C_out, 2).
    wb = jnp.concatenate(
        [weight[:, :, 0].astype(jnp.float32),
         bias.reshape(C_out, 1).astype(jnp.float32)],
        axis=1,
    )

    out = pl.pallas_call(
        _pitch_encoder_kernel,
        out_shape=jax.ShapeDtypeStruct((B, C_out, T), out_dtype),
        grid_spec=pltpu.PrefetchScalarGridSpec(
            num_scalar_prefetch=0,
            grid=grid,
            in_specs=[
                # f0 tile: squeeze batch, keep (C_in=1, TT) lane-dense rows.
                pl.BlockSpec((None, 1, TT), lambda bi, ti: (bi, 0, ti)),
                # packed weight/bias: resident across the whole grid.
                pl.BlockSpec((C_out, 2), lambda bi, ti: (0, 0)),
            ],
            out_specs=pl.BlockSpec((None, C_out, TT),
                                   lambda bi, ti: (bi, 0, ti)),
        ),
        compiler_params=pltpu.CompilerParams(
            dimension_semantics=("parallel", "parallel")),
    )(f0, wb)
    return out


def _reference(f0, weight, bias):
    # Pure-JAX f32 reference of the fused log(x+1) + 1x1 conv (PyTorch semantics).
    f0 = f0.astype(jnp.float32)
    return (jnp.einsum("oc,bct->bot", weight[:, :, 0].astype(jnp.float32),
                       jnp.log(f0 + 1.0))
            + bias.astype(jnp.float32)[None, :, None])


if __name__ == "__main__":
    key = jax.random.PRNGKey(0)
    k_f0, k_w, k_b, k_f0b = jax.random.split(key, 4)

    B, C_IN, T = 2, 1, 16
    C_OUT = 256

    # F0 values are positive frequencies (Hz); unvoiced frames would be 0.
    f0 = jax.random.uniform(k_f0, (B, C_IN, T), dtype=jnp.float32,
                            minval=50.0, maxval=400.0)

    # Deterministic synthetic Conv1d params (nn.Conv1d(1, 256, 1) shapes).
    weight = jax.random.normal(k_w, (C_OUT, C_IN, 1), dtype=jnp.float32) * 0.1
    bias = jax.random.normal(k_b, (C_OUT,), dtype=jnp.float32) * 0.01

    # Small-shape run (single full-extent tile per batch row).
    out = jax.block_until_ready(pitch_encoder_forward(f0, weight, bias))
    ref = _reference(f0, weight, bias)
    assert out.shape == (B, C_OUT, T)
    assert jnp.allclose(out, ref, atol=1e-5, rtol=1e-5)

    # Tiled / ragged-tail run to exercise the pipelined grid path
    # (T=384 with t_tile=256 -> tiles of 256 + masked 128 tail).
    T2 = 384
    f0_b = jax.random.uniform(k_f0b, (B, C_IN, T2), dtype=jnp.float32,
                              minval=0.0, maxval=400.0)
    out_b = jax.block_until_ready(
        pitch_encoder_forward(f0_b, weight, bias, t_tile=256))
    ref_b = _reference(f0_b, weight, bias)
    assert out_b.shape == (B, C_OUT, T2)
    assert jnp.allclose(out_b, ref_b, atol=1e-5, rtol=1e-5)

    # Non-128-multiple t_tile request gets rounded down internally; still correct.
    out_c = jax.block_until_ready(
        pitch_encoder_forward(f0_b, weight, bias, t_tile=300))
    assert jnp.allclose(out_c, ref_b, atol=1e-5, rtol=1e-5)

    print("KERNEL_OK")
</pallas_src>

<mosaic_0001>
module attributes {stable_mosaic.version = 11 : i64} {
  func.func @_pitch_encoder_kernel(%arg0: i32, %arg1: i32, %arg2: memref<1x1x16xf32, #tpu.memory_space<vmem>>, %arg3: memref<256x2xf32, #tpu.memory_space<vmem>>, %arg4: memref<1x256x16xf32, #tpu.memory_space<vmem>>) attributes {dimension_semantics = [#tpu.dimension_semantics<parallel>, #tpu.dimension_semantics<parallel>], iteration_bounds = array<i64: 2, 1>, scalar_prefetch = 0 : i64, scratch_operands = 0 : i64, tpu.core_type = #tpu.core_type<tc>, window_params = [{transform_indices = @transform_0, window_bounds = array<i64: 1, 1, 16>}, {pipeline_mode = #tpu.pipeline_mode<synchronous>, transform_indices = @transform_1, window_bounds = array<i64: 256, 2>}, {transform_indices = @transform_2, window_bounds = array<i64: 1, 256, 16>}]} {
    %c0 = arith.constant 0 : index
    %c0_0 = arith.constant 0 : index
    %c0_1 = arith.constant 0 : index
    %0 = vector.load %arg2[%c0, %c0_0, %c0_1] : memref<1x1x16xf32, #tpu.memory_space<vmem>>, vector<1x1x16xf32>
    %1 = vector.shape_cast %0 : vector<1x1x16xf32> to vector<1x16xf32>
    %cst = arith.constant 1.000000e+00 : f32
    %2 = vector.broadcast %cst : f32 to vector<1x16xf32>
    %3 = arith.addf %1, %2 : vector<1x16xf32>
    %4 = math.log %3 : vector<1x16xf32>
    %c0_2 = arith.constant 0 : index
    %c0_3 = arith.constant 0 : index
    %5 = vector.load %arg3[%c0_2, %c0_3] : memref<256x2xf32, #tpu.memory_space<vmem>>, vector<256x1xf32>
    %c0_4 = arith.constant 0 : index
    %c1 = arith.constant 1 : index
    %6 = vector.load %arg3[%c0_4, %c1] : memref<256x2xf32, #tpu.memory_space<vmem>>, vector<256x1xf32>
    %7 = vector.broadcast %5 : vector<256x1xf32> to vector<256x16xf32>
    %8 = vector.broadcast %4 : vector<1x16xf32> to vector<256x16xf32>
    %9 = arith.mulf %7, %8 : vector<256x16xf32>
    %10 = vector.broadcast %6 : vector<256x1xf32> to vector<256x16xf32>
    %11 = arith.addf %9, %10 : vector<256x16xf32>
    %c0_5 = arith.constant 0 : index
    %c0_6 = arith.constant 0 : index
    %c0_7 = arith.constant 0 : index
    %12 = vector.load %arg4[%c0_5, %c0_6, %c0_7] : memref<1x256x16xf32, #tpu.memory_space<vmem>>, vector<1x256x16xf32>
    %13 = vector.shape_cast %12 : vector<1x256x16xf32> to vector<256x16xf32>
    %14 = vector.shape_cast %11 : vector<256x16xf32> to vector<1x256x16xf32>
    tpu.vector_store %arg4[%c0_5, %c0_6, %c0_7], %14 {strides = array<i32>} : memref<1x256x16xf32, #tpu.memory_space<vmem>>, vector<1x256x16xf32>,
    return
  }
  func.func @transform_0(%arg0: i32, %arg1: i32) -> (i32, i32, i32) {
    %c0_i32 = arith.constant 0 : i32
    %c0_i32_0 = arith.constant 0 : i32
    return %arg0, %c0_i32, %arg1 : i32, i32, i32
  }
  func.func @transform_1(%arg0: i32, %arg1: i32) -> (i32, i32) {
    %c0_i32 = arith.constant 0 : i32
    %c0_i32_0 = arith.constant 0 : i32
    %c0_i32_1 = arith.constant 0 : i32
    return %c0_i32, %c0_i32_0 : i32, i32
  }
  func.func @transform_2(%arg0: i32, %arg1: i32) -> (i32, i32, i32) {
    %c0_i32 = arith.constant 0 : i32
    %c0_i32_0 = arith.constant 0 : i32
    return %arg0, %c0_i32, %arg1 : i32, i32, i32
  }
}

</mosaic_0001>

<bundles_post_ra>
// kernel: tpu_custom_call.1
= control target key start
LH: loop header
LB: loop body
LE: loop exit
PB: predicated region body
PF: predicated region fallthrough
CT: control target
= control target key end

     0   :  { %s756_s9 = smov 0   ;;  %s758_s10 = smov 0   ;;  %s1087_s0 = inlined_call_operand.vmem [shape: f32[2,1,16], index: 0, kind: input, shape index: {}]   ;;  %s1088_s1 = inlined_call_operand.vmem [shape: f32[256,2], index: 1, kind: input, shape index: {}]   ;;  %s1089_s2 = inlined_call_operand.vmem [shape: f32[2,256,16], index: 2, kind: output, shape index: {}]  }
   0x1   :  { %s760_s11 = smov 0  }
   0x2 LB: > { %s24_s12 = sadd.s32 1, %s733_s10  ;;  %p677_p0 = scmp.ge.s32.totalorder %s737_s11, 1  ;;  %s737_s11 = sphi %s760_s11, %s12_s11   ;;  %s733_s10 = sphi %s758_s10, %s1091_s10   ;;  %s729_s9 = sphi %s756_s9, %s1090_s9  }
   0x3   : > { %p26_p1 = scmp.ge.s32.totalorder %s24_s12, 2  ;;  %p129_p2 = scmp.lt.s32.totalorder %s737_s11, 3 }
   0x5   : > { %s1093_s12 = smov (%p26_p1, %s24_s12), 0  ;;  %p130_p3 = pnand %p677_p0, %p129_p2 }
   0x6   : > { %p155_p4 = scmp.lt.s32.totalorder (!%p130_p3), %s729_s9, 1 }
   0x7   : > { %133 = sbr.rel (%p130_p3) target bundleno = 266 (0x10a), region = 28 }
   0xc   : > { %v779_v0 = vld [vmem:[%s1088_s1 + $0x10] sm:$0xff]  ;;  %v784_v1 = vld [vmem:[%s1088_s1] sm:$0xff]  ;;  %v739_v2 = vmov 0   ;;  %v791_v3 = vld [vmem:[%s1088_s1 + $0x18] sm:$0xff]  ;;  %v740_v33 = vmov 1   ;;  %s1095_s9 = smov (!%p155_p4, %s729_s9), 1  ;;  %v366_v60 = vlaneseq }
   0xd   : > { %710 = vset.pattern.permute.xlu1 %v739_v2  ;;  %709 = vset.pattern.permute.xlu0 %v739_v2  ;;  %v174_v4 = vld [vmem:[%s1088_s1 + $0x8] sm:$0xff]  ;;  %v177_v6 = vld [vmem:[%s1088_s1 + $0x20] sm:$0xff]  ;;  %v180_v7 = vld [vmem:[%s1088_s1 + $0x38] sm:$0xff]  ;;  %s160_s3 = scalar_lea.vmem %s1087_s0, %s1095_s9  ;;  %s682_s4 = sshll.u32 %s1095_s9, 8  ;;  %vm563_vm0 = vcmask 130048  }
   0xe   : > { %217 = vperm.xlu1 %710, %v779_v0   ;;  %207 = vperm.xlu0 %709, %v784_v1   ;;  %v800_v5 = vld [vmem:[%s1088_s1 + $0x28] sm:$0xff]  ;;  %v179_v8 = vld [vmem:[%s1088_s1 + $0x30] sm:$0xff]  ;;  %v181_v10 = vld [vmem:[%s1088_s1 + $0x40] sm:$0xff]  ;;  %v367_v63 = vshrl.u32 %v366_v60, 7  ;;  %s956_s7 = scalar_lea.vmem %s1089_s2, %s682_s4 }
   0xf   : > { %v182_v9 = vld [vmem:[%s1088_s1 + $0x48] sm:$0xff]  ;;  %v184_v11 = vld [vmem:[%s1088_s1 + $0x58] sm:$0xff]  ;;  %v183_v12 = vld [vmem:[%s1088_s1 + $0x50] sm:$0xff] }
  0x10   : > { %v186_v13 = vld [vmem:[%s1088_s1 + $0x68] sm:$0xff]  ;;  %v185_v14 = vld [vmem:[%s1088_s1 + $0x60] sm:$0xff]  ;;  %v188_v15 = vld [vmem:[%s1088_s1 + $0x78] sm:$0xff] }
  0x11   : > { %v187_v16 = vld [vmem:[%s1088_s1 + $0x70] sm:$0xff]  ;;  %v190_v17 = vld [vmem:[%s1088_s1 + $0x88] sm:$0xff]  ;;  %v189_v18 = vld [vmem:[%s1088_s1 + $0x80] sm:$0xff] }
  0x12   : > { %222 = vperm.xlu1 %710, %v791_v3   ;;  %212 = vperm.xlu0 %709, %v174_v4   ;;  %v192_v19 = vld [vmem:[%s1088_s1 + $0x98] sm:$0xff]  ;;  %v191_v20 = vld [vmem:[%s1088_s1 + $0x90] sm:$0xff]  ;;  %v194_v21 = vld [vmem:[%s1088_s1 + $0xa8] sm:$0xff] }
  0x13   : > { %v193_v22 = vld [vmem:[%s1088_s1 + $0xa0] sm:$0xff]  ;;  %v196_v23 = vld [vmem:[%s1088_s1 + $0xb8] sm:$0xff]  ;;  %v195_v24 = vld [vmem:[%s1088_s1 + $0xb0] sm:$0xff] }
  0x14   : > { %v198_v25 = vld [vmem:[%s1088_s1 + $0xc8] sm:$0xff]  ;;  %v197_v26 = vld [vmem:[%s1088_s1 + $0xc0] sm:$0xff]  ;;  %v200_v27 = vld [vmem:[%s1088_s1 + $0xd8] sm:$0xff] }
  0x15   : > { %v199_v28 = vld [vmem:[%s1088_s1 + $0xd0] sm:$0xff]  ;;  %v202_v29 = vld [vmem:[%s1088_s1 + $0xe8] sm:$0xff]  ;;  %v201_v30 = vld [vmem:[%s1088_s1 + $0xe0] sm:$0xff] }
  0x16   : > { %232 = vperm.xlu1 %710, %v800_v5   ;;  %227 = vperm.xlu0 %709, %v177_v6   ;;  %v204_v31 = vld [vmem:[%s1088_s1 + $0xf8] sm:$0xff]  ;;  %v203_v32 = vld [vmem:[%s1088_s1 + $0xf0] sm:$0xff]  ;;  %v169_v52 = vld [vmem:[%s160_s3] sm:$0x1] }
  0x17   : > { %v170_v53 = vadd.f32 1.0, %v169_v52 }
  0x19   : > { %713 = vlog2.f32 %v170_v53 }
  0x1a   : > { %242 = vperm.xlu1 %710, %v180_v7   ;;  %237 = vperm.xlu0 %709, %v179_v8  }
  0x1e   : > { %252 = vperm.xlu1 %710, %v182_v9   ;;  %247 = vperm.xlu0 %709, %v181_v10  }
  0x22   : > { %262 = vperm.xlu1 %710, %v184_v11   ;;  %257 = vperm.xlu0 %709, %v183_v12  }
  0x26   : > { %272 = vperm.xlu1 %710, %v186_v13   ;;  %267 = vperm.xlu0 %709, %v185_v14   ;;  %v714_v2 = vpop.eup %713 }
  0x2a   : > { %282 = vperm.xlu1 %710, %v188_v15   ;;  %277 = vperm.xlu0 %709, %v187_v16  }
  0x2e   : > { %292 = vperm.xlu1 %710, %v190_v17   ;;  %287 = vperm.xlu0 %709, %v189_v18  }
  0x32   : > { %302 = vperm.xlu1 %710, %v192_v19   ;;  %297 = vperm.xlu0 %709, %v191_v20  }
  0x36   : > { %312 = vperm.xlu1 %710, %v194_v21   ;;  %307 = vperm.xlu0 %709, %v193_v22  }
  0x3a   : > { %322 = vperm.xlu1 %710, %v196_v23   ;;  %317 = vperm.xlu0 %709, %v195_v24  }
  0x3e   : > { %332 = vperm.xlu1 %710, %v198_v25   ;;  %327 = vperm.xlu0 %709, %v197_v26  }
  0x42   : > { %342 = vperm.xlu1 %710, %v200_v27   ;;  %337 = vperm.xlu0 %709, %v199_v28  }
  0x46   : > { %352 = vperm.xlu1 %710, %v202_v29   ;;  %347 = vperm.xlu0 %709, %v201_v30  }
  0x4a   : > { %362 = vperm.xlu1 %710, %v204_v31   ;;  %357 = vperm.xlu0 %709, %v203_v32  }
  0x4e   : > { %712 = vset.pattern.permute.xlu1 %v740_v33  ;;  %711 = vset.pattern.permute.xlu0 %v740_v33 }
  0x4f   : > { %408 = vperm.xlu1 %712, %v174_v4   ;;  %404 = vperm.xlu0 %711, %v784_v1   ;;  %v172_v4 = vmul.f32 0.6931472, %v714_v2 }
  0x53   : > { %412 = vperm.xlu1 %712, %v779_v0   ;;  %416 = vperm.xlu0 %711, %v791_v3   ;;  %v368_v3 = vsub.s32 0, %v367_v63 }
  0x57   : > { %420 = vperm.xlu1 %712, %v177_v6   ;;  %424 = vperm.xlu0 %711, %v800_v5  }
  0x5b   : > { %428 = vperm.xlu1 %712, %v179_v8   ;;  %432 = vperm.xlu0 %711, %v180_v7   ;;  %v944_v7 = vrot.slane %v172_v4, %v368_v3 }
  0x5f   : > { %436 = vperm.xlu1 %712, %v181_v10   ;;  %440 = vperm.xlu0 %711, %v182_v9  }
  0x63   : > { %444 = vperm.xlu1 %712, %v183_v12   ;;  %448 = vperm.xlu0 %711, %v184_v11  }
  0x67   : > { %452 = vperm.xlu1 %712, %v185_v14   ;;  %456 = vperm.xlu0 %711, %v186_v13  }
  0x6b   : > { %460 = vperm.xlu1 %712, %v187_v16   ;;  %464 = vperm.xlu0 %711, %v188_v15  }
  0x6f   : > { %468 = vperm.xlu1 %712, %v189_v18   ;;  %472 = vperm.xlu0 %711, %v190_v17  }
  0x73   : > { %476 = vperm.xlu1 %712, %v191_v20   ;;  %480 = vperm.xlu0 %711, %v192_v19  }
  0x77   : > { %484 = vperm.xlu1 %712, %v193_v22   ;;  %488 = vperm.xlu0 %711, %v194_v21  }
  0x7b   : > { %492 = vperm.xlu1 %712, %v195_v24   ;;  %496 = vperm.xlu0 %711, %v196_v23  }
  0x7f   : > { %500 = vperm.xlu1 %712, %v197_v26   ;;  %504 = vperm.xlu0 %711, %v198_v25  }
  0x83   : > { %508 = vperm.xlu1 %712, %v199_v28   ;;  %512 = vperm.xlu0 %711, %v200_v27  }
  0x87   : > { %516 = vperm.xlu1 %712, %v201_v30   ;;  %520 = vperm.xlu0 %711, %v202_v29  }
  0x89   : > { %v218_v34 = vpop.permute.xlu1 %217  ;;  %v208_v35 = vpop.permute.xlu0 %207 }
  0x8a   : > { %v371_v10 = vmul.f32 %v944_v7, %v208_v35  ;;  %v373_v16 = vmul.f32 %v944_v7, %v218_v34 }
  0x8b   : > { %524 = vperm.xlu1 %712, %v203_v32   ;;  %528 = vperm.xlu0 %711, %v204_v31  }
  0x8d   : > { %v223_v36 = vpop.permute.xlu1 %222  ;;  %v213_v37 = vpop.permute.xlu0 %212 }
  0x8e   : > { %v372_v11 = vmul.f32 %v944_v7, %v213_v37  ;;  %v374_v17 = vmul.f32 %v944_v7, %v223_v36 }
  0x91   : > { %v233_v38 = vpop.permute.xlu1 %232  ;;  %v228_v39 = vpop.permute.xlu0 %227 }
  0x92   : > { %v376_v22 = vmul.f32 %v944_v7, %v233_v38  ;;  %v375_v23 = vmul.f32 %v944_v7, %v228_v39 }
  0x95   : > { %v888_v40 = vpop.permute.xlu1 %242  ;;  %v890_v41 = vpop.permute.xlu0 %237 }
  0x96   : > { %v378_v28 = vmul.f32 %v944_v7, %v888_v40  ;;  %v377_v29 = vmul.f32 %v944_v7, %v890_v41 }
  0x99   : > { %v892_v42 = vpop.permute.xlu1 %252  ;;  %v894_v43 = vpop.permute.xlu0 %247 }
  0x9a   : > { %v380_v34 = vmul.f32 %v944_v7, %v892_v42  ;;  %v379_v35 = vmul.f32 %v944_v7, %v894_v43 }
  0x9d   : > { %v896_v44 = vpop.permute.xlu1 %262  ;;  %v898_v45 = vpop.permute.xlu0 %257 }
  0x9e   : > { %v382_v40 = vmul.f32 %v944_v7, %v896_v44  ;;  %v381_v41 = vmul.f32 %v944_v7, %v898_v45 }
  0xa1   : > { %v901_v46 = vpop.permute.xlu1 %272  ;;  %v903_v47 = vpop.permute.xlu0 %267 }
  0xa2   : > { %v384_v60 = vmul.f32 %v944_v7, %v901_v46  ;;  %v383_v63 = vmul.f32 %v944_v7, %v903_v47 }
  0xa5   : > { %v908_v48 = vpop.permute.xlu1 %282  ;;  %v910_v49 = vpop.permute.xlu0 %277 }
  0xa6   : > { %v386_v4 = vmul.f32 %v944_v7, %v908_v48 }
  0xa9   : > { %v916_v50 = vpop.permute.xlu1 %292  ;;  %v918_v51 = vpop.permute.xlu0 %287 }
  0xad   : > { %v920_v54 = vpop.permute.xlu1 %302  ;;  %v922_v55 = vpop.permute.xlu0 %297 }
  0xb1   : > { %v924_v56 = vpop.permute.xlu1 %312  ;;  %v926_v57 = vpop.permute.xlu0 %307 }
  0xb5   : > { %v928_v58 = vpop.permute.xlu1 %322  ;;  %v930_v59 = vpop.permute.xlu0 %317 }
  0xb9   : > { %v932_v61 = vpop.permute.xlu1 %332  ;;  %v934_v62 = vpop.permute.xlu0 %327 }
  0xbd   : > { %v936_v0 = vpop.permute.xlu1 %342  ;;  %v938_v1 = vpop.permute.xlu0 %337 }
  0xc1   : > { %v940_v5 = vpop.permute.xlu1 %352  ;;  %v942_v6 = vpop.permute.xlu0 %347 }
  0xc5   : > { %v946_v8 = vpop.permute.xlu1 %362  ;;  %v948_v9 = vpop.permute.xlu0 %357 }
  0xca   : > { %v409_v12 = vpop.permute.xlu1 %408  ;;  %v405_v13 = vpop.permute.xlu0 %404 }
  0xcb   : > { %v532_v14 = vadd.f32 %v409_v12, %v372_v11  ;;  %v531_v15 = vadd.f32 %v405_v13, %v371_v10  ;;  %v385_v10 = vmul.f32 %v944_v7, %v910_v49  ;;  %v388_v13 = vmul.f32 %v944_v7, %v916_v50 }
  0xcd   : > { %565 = vst.msk [vmem:[%s956_s7 + $0x8] sm:$0xff] %vm563_vm0, %v532_v14  ;;  %564 = vst.msk [vmem:[%s956_s7] sm:$0xff] %vm563_vm0, %v531_v15  ;;  %v387_v14 = vmul.f32 %v944_v7, %v918_v51 }
  0xce   : > { %v413_v18 = vpop.permute.xlu1 %412  ;;  %v417_v19 = vpop.permute.xlu0 %416 }
  0xcf   : > { %v533_v20 = vadd.f32 %v413_v18, %v373_v16  ;;  %v534_v21 = vadd.f32 %v417_v19, %v374_v17  ;;  %v390_v17 = vmul.f32 %v944_v7, %v920_v54  ;;  %v389_v18 = vmul.f32 %v944_v7, %v922_v55 }
  0xd1   : > { %566 = vst.msk [vmem:[%s956_s7 + $0x10] sm:$0xff] %vm563_vm0, %v533_v20  ;;  %567 = vst.msk [vmem:[%s956_s7 + $0x18] sm:$0xff] %vm563_vm0, %v534_v21  ;;  %v392_v21 = vmul.f32 %v944_v7, %v924_v56 }
  0xd2   : > { %v421_v24 = vpop.permute.xlu1 %420  ;;  %v425_v25 = vpop.permute.xlu0 %424 }
  0xd3   : > { %v535_v26 = vadd.f32 %v421_v24, %v375_v23  ;;  %v536_v27 = vadd.f32 %v425_v25, %v376_v22  ;;  %v391_v22 = vmul.f32 %v944_v7, %v926_v57  ;;  %v394_v25 = vmul.f32 %v944_v7, %v928_v58 }
  0xd5   : > { %568 = vst.msk [vmem:[%s956_s7 + $0x20] sm:$0xff] %vm563_vm0, %v535_v26  ;;  %569 = vst.msk [vmem:[%s956_s7 + $0x28] sm:$0xff] %vm563_vm0, %v536_v27  ;;  %v393_v26 = vmul.f32 %v944_v7, %v930_v59 }
  0xd6   : > { %v429_v30 = vpop.permute.xlu1 %428  ;;  %v433_v31 = vpop.permute.xlu0 %432 }
  0xd7   : > { %v537_v32 = vadd.f32 %v429_v30, %v377_v29  ;;  %v538_v33 = vadd.f32 %v433_v31, %v378_v28  ;;  %v396_v29 = vmul.f32 %v944_v7, %v932_v61  ;;  %v395_v30 = vmul.f32 %v944_v7, %v934_v62 }
  0xd9   : > { %570 = vst.msk [vmem:[%s956_s7 + $0x30] sm:$0xff] %vm563_vm0, %v537_v32  ;;  %571 = vst.msk [vmem:[%s956_s7 + $0x38] sm:$0xff] %vm563_vm0, %v538_v33  ;;  %v398_v33 = vmul.f32 %v944_v7, %v936_v0  ;;  %v399_v0 = vmul.f32 %v944_v7, %v942_v6 }
  0xda   : > { %v437_v36 = vpop.permute.xlu1 %436  ;;  %v441_v37 = vpop.permute.xlu0 %440 }
  0xdb   : > { %v539_v38 = vadd.f32 %v437_v36, %v379_v35  ;;  %v540_v39 = vadd.f32 %v441_v37, %v380_v34  ;;  %v397_v34 = vmul.f32 %v944_v7, %v938_v1  ;;  %v400_v37 = vmul.f32 %v944_v7, %v940_v5 }
  0xdd   : > { %572 = vst.msk [vmem:[%s956_s7 + $0x40] sm:$0xff] %vm563_vm0, %v539_v38  ;;  %573 = vst.msk [vmem:[%s956_s7 + $0x48] sm:$0xff] %vm563_vm0, %v540_v39 }
  0xde   : > { %v445_v42 = vpop.permute.xlu1 %444  ;;  %v449_v43 = vpop.permute.xlu0 %448 }
  0xdf   : > { %v541_v52 = vadd.f32 %v445_v42, %v381_v41  ;;  %v542_v53 = vadd.f32 %v449_v43, %v382_v40  ;;  %v402_v41 = vmul.f32 %v944_v7, %v946_v8  ;;  %v401_v42 = vmul.f32 %v944_v7, %v948_v9 }
  0xe1   : > { %574 = vst.msk [vmem:[%s956_s7 + $0x50] sm:$0xff] %vm563_vm0, %v541_v52  ;;  %575 = vst.msk [vmem:[%s956_s7 + $0x58] sm:$0xff] %vm563_vm0, %v542_v53 }
  0xe2   : > { %v453_v44 = vpop.permute.xlu1 %452  ;;  %v457_v45 = vpop.permute.xlu0 %456 }
  0xe3   : > { %v543_v2 = vadd.f32 %v453_v44, %v383_v63  ;;  %v544_v3 = vadd.f32 %v457_v45, %v384_v60 }
  0xe5   : > { %576 = vst.msk [vmem:[%s956_s7 + $0x60] sm:$0xff] %vm563_vm0, %v543_v2  ;;  %577 = vst.msk [vmem:[%s956_s7 + $0x68] sm:$0xff] %vm563_vm0, %v544_v3 }
  0xe6   : > { %v461_v46 = vpop.permute.xlu1 %460  ;;  %v465_v47 = vpop.permute.xlu0 %464 }
  0xe7   : > { %v545_v11 = vadd.f32 %v461_v46, %v385_v10  ;;  %v546_v12 = vadd.f32 %v465_v47, %v386_v4 }
  0xe9   : > { %578 = vst.msk [vmem:[%s956_s7 + $0x70] sm:$0xff] %vm563_vm0, %v545_v11  ;;  %579 = vst.msk [vmem:[%s956_s7 + $0x78] sm:$0xff] %vm563_vm0, %v546_v12 }
  0xea   : > { %v469_v48 = vpop.permute.xlu1 %468  ;;  %v473_v49 = vpop.permute.xlu0 %472 }
  0xeb   : > { %v547_v15 = vadd.f32 %v469_v48, %v387_v14  ;;  %v548_v16 = vadd.f32 %v473_v49, %v388_v13 }
  0xed   : > { %580 = vst.msk [vmem:[%s956_s7 + $0x80] sm:$0xff] %vm563_vm0, %v547_v15  ;;  %581 = vst.msk [vmem:[%s956_s7 + $0x88] sm:$0xff] %vm563_vm0, %v548_v16 }
  0xee   : > { %v477_v50 = vpop.permute.xlu1 %476  ;;  %v481_v51 = vpop.permute.xlu0 %480 }
  0xef   : > { %v549_v19 = vadd.f32 %v477_v50, %v389_v18  ;;  %v550_v20 = vadd.f32 %v481_v51, %v390_v17 }
  0xf1   : > { %582 = vst.msk [vmem:[%s956_s7 + $0x90] sm:$0xff] %vm563_vm0, %v549_v19  ;;  %583 = vst.msk [vmem:[%s956_s7 + $0x98] sm:$0xff] %vm563_vm0, %v550_v20 }
  0xf2   : > { %v485_v54 = vpop.permute.xlu1 %484  ;;  %v489_v55 = vpop.permute.xlu0 %488 }
  0xf3   : > { %v551_v23 = vadd.f32 %v485_v54, %v391_v22  ;;  %v552_v24 = vadd.f32 %v489_v55, %v392_v21 }
  0xf5   : > { %584 = vst.msk [vmem:[%s956_s7 + $0xa0] sm:$0xff] %vm563_vm0, %v551_v23  ;;  %585 = vst.msk [vmem:[%s956_s7 + $0xa8] sm:$0xff] %vm563_vm0, %v552_v24 }
  0xf6   : > { %v493_v56 = vpop.permute.xlu1 %492  ;;  %v497_v57 = vpop.permute.xlu0 %496 }
  0xf7   : > { %v553_v27 = vadd.f32 %v493_v56, %v393_v26  ;;  %v554_v28 = vadd.f32 %v497_v57, %v394_v25 }
  0xf9   : > { %586 = vst.msk [vmem:[%s956_s7 + $0xb0] sm:$0xff] %vm563_vm0, %v553_v27  ;;  %587 = vst.msk [vmem:[%s956_s7 + $0xb8] sm:$0xff] %vm563_vm0, %v554_v28 }
  0xfa   : > { %v501_v58 = vpop.permute.xlu1 %500  ;;  %v505_v59 = vpop.permute.xlu0 %504 }
  0xfb   : > { %v555_v31 = vadd.f32 %v501_v58, %v395_v30  ;;  %v556_v32 = vadd.f32 %v505_v59, %v396_v29 }
  0xfd   : > { %588 = vst.msk [vmem:[%s956_s7 + $0xc0] sm:$0xff] %vm563_vm0, %v555_v31  ;;  %589 = vst.msk [vmem:[%s956_s7 + $0xc8] sm:$0xff] %vm563_vm0, %v556_v32 }
  0xfe   : > { %v509_v61 = vpop.permute.xlu1 %508  ;;  %v513_v62 = vpop.permute.xlu0 %512 }
  0xff   : > { %v557_v35 = vadd.f32 %v509_v61, %v397_v34  ;;  %v558_v36 = vadd.f32 %v513_v62, %v398_v33 }
 0x101   : > { %590 = vst.msk [vmem:[%s956_s7 + $0xd0] sm:$0xff] %vm563_vm0, %v557_v35  ;;  %591 = vst.msk [vmem:[%s956_s7 + $0xd8] sm:$0xff] %vm563_vm0, %v558_v36 }
 0x102   : > { %v517_v1 = vpop.permute.xlu1 %516  ;;  %v521_v38 = vpop.permute.xlu0 %520 }
 0x103   : > { %v559_v39 = vadd.f32 %v517_v1, %v399_v0  ;;  %v560_v40 = vadd.f32 %v521_v38, %v400_v37 }
 0x105   : > { %592 = vst.msk [vmem:[%s956_s7 + $0xe0] sm:$0xff] %vm563_vm0, %v559_v39  ;;  %593 = vst.msk [vmem:[%s956_s7 + $0xe8] sm:$0xff] %vm563_vm0, %v560_v40 }
 0x106   : > { %v525_v5 = vpop.permute.xlu1 %524  ;;  %v529_v6 = vpop.permute.xlu0 %528 }
 0x107   : > { %v561_v43 = vadd.f32 %v525_v5, %v401_v42  ;;  %v562_v52 = vadd.f32 %v529_v6, %v402_v41 }
 0x109   : > { %594 = vst.msk [vmem:[%s956_s7 + $0xf0] sm:$0xff] %vm563_vm0, %v561_v43  ;;  %595 = vst.msk [vmem:[%s956_s7 + $0xf8] sm:$0xff] %vm563_vm0, %v562_v52 }
 0x10a PF: > { %s12_s11 = sadd.s32 1, %s737_s11   ;;  %s1090_s9 = smov %s733_s10 }
 0x10b   : > { %p9_p5 = scmp.ge.s32.totalorder %s12_s11, 4   ;;  %s1091_s10 = smov %s1093_s12 }
 0x10d   :  { %11 = sbr.rel (!%p9_p5) target bundleno = 2 (0x2), region = 58 }

</bundles_post_ra>
